<compile_context>
chip_gen: v7x
topology: tpu7x:2x2x1
jax: 0.10.0
libtpu: 0.0.40
codegen_flags: <defaults>
</compile_context>

<pallas_src>
import functools

import jax
import jax.numpy as jnp
from jax.experimental import pallas as pl
from jax.experimental.pallas import tpu as pltpu


def _round_up(a: int, b: int) -> int:
    return (a + b - 1) // b * b


def _usable_vmem_bytes() -> int:
    """~75% of physical VMEM (headroom for compiler scratch); v7x-safe default."""
    try:
        cap = int(pltpu.get_tpu_info().vmem_capacity_bytes)
    except Exception:
        cap = 64 * 1024 * 1024  # conservative (v7x-sized) default
    return max(cap * 3 // 4, 16 * 1024 * 1024)


def _choose_tile_t(T: int, D: int, H: int, usable_vmem: int) -> int:
    """Adaptive time tile: ~4 MiB x tiles, clamped so the whole working set
    (2x double-buffered x tiles + f32 intermediates + weights) fits in VMEM."""
    target_rows = max((4 * 1024 * 1024) // (4 * max(D, 1)), 128)
    tile_t = _round_up(target_rows, 128)
    tile_t = max(512, min(tile_t, 8192))
    weight_bytes = 4 * (D * H + H + 8 * H)
    budget = usable_vmem - 2 * weight_bytes - (2 << 20)
    per_row_bytes = 4 * (2 * D + 2 * H) + 16  # x (double buffered) + h/tanh temps + out
    if budget > 0:
        cap = max(128, budget // per_row_bytes // 128 * 128)
        tile_t = min(tile_t, cap)
    if tile_t >= T:
        return T  # single full block; no ragged boundary at all
    return tile_t


def _score_kernel(x_ref, w1_ref, b1_ref, w2_ref, b2_ref, o_ref):
    # Linear(D -> H) + Tanh: MXU matmul with f32 accumulation, tanh on the EUP.
    h = jnp.dot(x_ref[...], w1_ref[...], preferred_element_type=jnp.float32)
    h = jnp.tanh(h + b1_ref[...].astype(jnp.float32))            # (tile_t, H) f32

    # Linear(H -> 1), lane-dense: (8, H) x (tile_t, H)^T -> (8, tile_t).
    # Only row 0 of w2 is real; rows 1..7 are zero padding for sublane alignment.
    s8 = jax.lax.dot_general(
        w2_ref[...].astype(jnp.float32), h,
        dimension_numbers=(((1,), (1,)), ((), ())),
        preferred_element_type=jnp.float32,
    )
    s = s8[0:1, :] + b2_ref[0]                                    # (1, tile_t)
    o_ref[...] = s[None, :, :]                                    # (1, 1, tile_t)


def _softmax_kernel(s_ref, o_ref, *, seq_len: int, tile_t: int):
    # Global (dim=0) softmax over the score slab; positions >= seq_len masked.
    s = s_ref[...]                                                # (num_tiles, tile_t)
    row = jax.lax.broadcasted_iota(jnp.int32, s.shape, 0)
    lane = jax.lax.broadcasted_iota(jnp.int32, s.shape, 1)
    valid = (row * tile_t + lane) < seq_len
    masked = jnp.where(valid, s, jnp.float32(-jnp.inf))
    m = jnp.max(masked, axis=1, keepdims=True)
    m = jnp.max(m, axis=0, keepdims=True)                         # global max (1,1)
    e = jnp.where(valid, jnp.exp(s - m), jnp.float32(0.0))
    d = jnp.sum(e, axis=1, keepdims=True)
    d = jnp.sum(d, axis=0, keepdims=True)                         # global sum (1,1)
    o_ref[...] = e / d                                            # exact divide


def _score_call(x, w1_t, b1, w2_pad, b2, *, tile_t, num_tiles, vmem_limit,
                single_buffer_weights):
    D = x.shape[1]
    H = w1_t.shape[1]
    resident_kw = (dict(pipeline_mode=pl.Buffered(buffer_count=1))
                   if single_buffer_weights else {})
    return pl.pallas_call(
        _score_kernel,
        out_shape=jax.ShapeDtypeStruct((num_tiles, 1, tile_t), jnp.float32),
        grid=(num_tiles,),
        in_specs=[
            pl.BlockSpec((tile_t, D), lambda i: (i, 0)),            # x: streamed tiles
            pl.BlockSpec((D, H), lambda i: (0, 0), **resident_kw),  # w1: resident
            pl.BlockSpec((1, H), lambda i: (0, 0), **resident_kw),  # b1: resident
            pl.BlockSpec((8, H), lambda i: (0, 0), **resident_kw),  # w2 (padded): resident
            pl.BlockSpec(memory_space=pltpu.MemorySpace.SMEM),       # b2: SMEM scalar
        ],
        out_specs=pl.BlockSpec((1, 1, tile_t), lambda i: (i, 0, 0)),
        compiler_params=pltpu.CompilerParams(
            dimension_semantics=("parallel",),   # per-tile output -> shardable across TCs
            vmem_limit_bytes=vmem_limit,
        ),
    )(x, w1_t, b1, w2_pad, b2)


def temporal_attention(x, w1_t, b1, w2, b2, *, tile_t=None):
    """TemporalAttention forward pass.

    x:    (T, D)  input sequence (time-major, as in the PyTorch module)
    w1_t: (D, H)  first Linear weight, transposed (PyTorch stores (H, D))
    b1:   (1, H)  first Linear bias
    w2:   (1, H)  second Linear weight (out=1, in=H), PyTorch layout
    b2:   (1,)    second Linear bias
    returns (T, 1) attention weights = softmax over dim 0
    """
    T, D = x.shape
    H = w1_t.shape[1]
    out_dtype = x.dtype

    usable_vmem = _usable_vmem_bytes()
    if tile_t is None:
        tile_t = _choose_tile_t(T, D, H, usable_vmem)
    else:
        tile_t = int(tile_t)
        tile_t = T if tile_t >= T else _round_up(max(tile_t, 8), 8)
    num_tiles = pl.cdiv(T, tile_t)

    # Pad w2 to 8 sublane rows (row 0 real, zeros elsewhere): tiny, weight-only.
    w2_pad = jnp.pad(w2, ((0, 7), (0, 0)))                         # (8, H)

    try:
        scores = _score_call(x, w1_t, b1, w2_pad, b2, tile_t=tile_t,
                             num_tiles=num_tiles, vmem_limit=usable_vmem,
                             single_buffer_weights=True)
    except Exception:
        # This JAX build rejected pl.Buffered(1) -> fall back to default buffering.
        scores = _score_call(x, w1_t, b1, w2_pad, b2, tile_t=tile_t,
                             num_tiles=num_tiles, vmem_limit=usable_vmem,
                             single_buffer_weights=False)

    scores2d = scores.reshape(num_tiles, tile_t)   # contiguous (free) reshape

    slab_bytes = num_tiles * tile_t * 4
    if 2 * slab_bytes + (4 << 20) <= usable_vmem:
        probs = pl.pallas_call(
            functools.partial(_softmax_kernel, seq_len=T, tile_t=tile_t),
            out_shape=jax.ShapeDtypeStruct((num_tiles, tile_t), jnp.float32),
            in_specs=[pl.BlockSpec(memory_space=pltpu.MemorySpace.VMEM)],
            out_specs=pl.BlockSpec(memory_space=pltpu.MemorySpace.VMEM),
            compiler_params=pltpu.CompilerParams(vmem_limit_bytes=usable_vmem),
        )(scores2d)
        flat = probs.reshape(num_tiles * tile_t)[:T]
    else:
        # TODO(synk): tiled two-pass Pallas softmax for sequences whose 4*T-byte
        # score slab exceeds VMEM (extremely long T); fall back to XLA softmax.
        flat = jax.nn.softmax(scores2d.reshape(num_tiles * tile_t)[:T])

    return flat.reshape(T, 1).astype(out_dtype)


def _reference(x, w1, b1_row, w2, b2):
    h = jnp.tanh(x @ w1.T + b1_row)
    s = h @ w2.T + b2
    return jax.nn.softmax(s, axis=0)


if __name__ == "__main__":
    # Small shapes consistent with the module: seq T=8, input_dim=32, hidden_dim=32
    T, input_dim, hidden_dim = 8, 32, 32
    key = jax.random.PRNGKey(0)
    kx, kw1, kb1, kw2, kb2 = jax.random.split(key, 5)

    x = jax.random.normal(kx, (T, input_dim), dtype=jnp.float32)
    # PyTorch Linear stores W as (out, in); pass W.T for the first layer.
    w1 = jax.random.normal(kw1, (hidden_dim, input_dim), dtype=jnp.float32) * 0.1
    b1 = jax.random.normal(kb1, (hidden_dim,), dtype=jnp.float32) * 0.1
    w2 = jax.random.normal(kw2, (1, hidden_dim), dtype=jnp.float32) * 0.1
    b2 = jax.random.normal(kb2, (1,), dtype=jnp.float32) * 0.1

    out = jax.block_until_ready(temporal_attention(
        x, w1.T, b1.reshape(1, hidden_dim), w2, b2))
    ref = _reference(x, w1, b1.reshape(1, hidden_dim), w2, b2)
    assert out.shape == (T, 1)
    assert jnp.allclose(out, ref, atol=1e-5, rtol=1e-4), float(jnp.max(jnp.abs(out - ref)))
    assert abs(float(jnp.sum(out)) - 1.0) < 1e-5   # exact-divide softmax sums to 1

    # Multi-tile path with a ragged final boundary block (tile_t forced small so
    # T=1000 spans 4 grid steps; the seq_len mask handles the partial tile).
    T2, D2, H2 = 1000, 64, 32
    k2 = jax.random.split(key, 4)
    x2 = jax.random.normal(k2[0], (T2, D2), dtype=jnp.float32)
    w1b = jax.random.normal(k2[1], (H2, D2), dtype=jnp.float32) * 0.1
    b1b = jax.random.normal(k2[2], (H2,), dtype=jnp.float32) * 0.1
    w2b = jax.random.normal(k2[3], (1, H2), dtype=jnp.float32) * 0.1
    b2b = jnp.zeros((1,), dtype=jnp.float32)
    out2 = jax.block_until_ready(temporal_attention(
        x2, w1b.T, b1b.reshape(1, H2), w2b, b2b, tile_t=256))
    ref2 = _reference(x2, w1b, b1b.reshape(1, H2), w2b, b2b)
    assert out2.shape == (T2, 1)
    assert jnp.allclose(out2, ref2, atol=1e-6, rtol=1e-3), float(jnp.max(jnp.abs(out2 - ref2)))

    # Default adaptive tiling path (single full tile for T=1000).
    out3 = jax.block_until_ready(temporal_attention(
        x2, w1b.T, b1b.reshape(1, H2), w2b, b2b))
    assert jnp.allclose(out3, ref2, atol=1e-6, rtol=1e-3), float(jnp.max(jnp.abs(out3 - ref2)))

    print("KERNEL_OK")
</pallas_src>

<mosaic_0001>
module attributes {stable_mosaic.version = 11 : i64} {
  func.func @_score_kernel(%arg0: i32, %arg1: memref<8x32xf32, #tpu.memory_space<vmem>>, %arg2: memref<32x32xf32, #tpu.memory_space<vmem>>, %arg3: memref<1x32xf32, #tpu.memory_space<vmem>>, %arg4: memref<8x32xf32, #tpu.memory_space<vmem>>, %arg5: memref<1xf32, #tpu.memory_space<smem>>, %arg6: memref<1x1x8xf32, #tpu.memory_space<vmem>>) attributes {dimension_semantics = [#tpu.dimension_semantics<parallel>], iteration_bounds = array<i64: 1>, scalar_prefetch = 0 : i64, scratch_operands = 0 : i64, tpu.core_type = #tpu.core_type<tc>, window_params = [{transform_indices = @transform_0, window_bounds = array<i64: 8, 32>}, {pipeline_mode = #tpu.pipeline_mode<synchronous>, transform_indices = @transform_1, window_bounds = array<i64: 32, 32>}, {pipeline_mode = #tpu.pipeline_mode<synchronous>, transform_indices = @transform_2, window_bounds = array<i64: 1, 32>}, {pipeline_mode = #tpu.pipeline_mode<synchronous>, transform_indices = @transform_3, window_bounds = array<i64: 8, 32>}, {transform_indices = @transform_4, window_bounds = array<i64: 1>}, {transform_indices = @transform_5, window_bounds = array<i64: 1, 1, 8>}]} {
    %c0 = arith.constant 0 : index
    %c0_0 = arith.constant 0 : index
    %0 = vector.load %arg1[%c0, %c0_0] : memref<8x32xf32, #tpu.memory_space<vmem>>, vector<8x32xf32>
    %c0_1 = arith.constant 0 : index
    %c0_2 = arith.constant 0 : index
    %1 = vector.load %arg2[%c0_1, %c0_2] : memref<32x32xf32, #tpu.memory_space<vmem>>, vector<32x32xf32>
    %cst = arith.constant dense<0.000000e+00> : vector<8x32xf32>
    %2 = tpu.matmul %0, %1, %cst {dimension_numbers = #tpu.dot_dimension_numbers<[1], [0], [0], [1], [0, 0, 1, 1], [], []>} : vector<8x32xf32>, vector<32x32xf32>, vector<8x32xf32> -> vector<8x32xf32>
    %c0_3 = arith.constant 0 : index
    %c0_4 = arith.constant 0 : index
    %3 = vector.load %arg3[%c0_3, %c0_4] : memref<1x32xf32, #tpu.memory_space<vmem>>, vector<1x32xf32>
    %4 = vector.broadcast %3 : vector<1x32xf32> to vector<8x32xf32>
    %5 = arith.addf %2, %4 : vector<8x32xf32>
    %6 = math.tanh %5 : vector<8x32xf32>
    %c0_5 = arith.constant 0 : index
    %c0_6 = arith.constant 0 : index
    %7 = vector.load %arg4[%c0_5, %c0_6] : memref<8x32xf32, #tpu.memory_space<vmem>>, vector<8x32xf32>
    %cst_7 = arith.constant dense<0.000000e+00> : vector<8x8xf32>
    %8 = tpu.matmul %7, %6, %cst_7 {dimension_numbers = #tpu.dot_dimension_numbers<[1], [1], [0], [0], [0, 0, 1, 0], [], []>} : vector<8x32xf32>, vector<8x32xf32>, vector<8x8xf32> -> vector<8x8xf32>
    %9 = vector.extract_strided_slice %8 {offsets = [0, 0], sizes = [1, 8], strides = [1, 1]} : vector<8x8xf32> to vector<1x8xf32>
    %c0_8 = arith.constant 0 : index
    %10 = memref.load %arg5[%c0_8] : memref<1xf32, #tpu.memory_space<smem>>
    %11 = vector.broadcast %10 : f32 to vector<1x8xf32>
    %12 = arith.addf %9, %11 : vector<1x8xf32>
    %13 = vector.shape_cast %12 : vector<1x8xf32> to vector<1x1x8xf32>
    %c0_9 = arith.constant 0 : index
    %c0_10 = arith.constant 0 : index
    %c0_11 = arith.constant 0 : index
    %14 = vector.load %arg6[%c0_9, %c0_10, %c0_11] : memref<1x1x8xf32, #tpu.memory_space<vmem>>, vector<1x1x8xf32>
    tpu.vector_store %arg6[%c0_9, %c0_10, %c0_11], %13 {strides = array<i32>} : memref<1x1x8xf32, #tpu.memory_space<vmem>>, vector<1x1x8xf32>,
    return
  }
  func.func @transform_0(%arg0: i32) -> (i32, i32) {
    %c0_i32 = arith.constant 0 : i32
    %c0_i32_0 = arith.constant 0 : i32
    return %arg0, %c0_i32 : i32, i32
  }
  func.func @transform_1(%arg0: i32) -> (i32, i32) {
    %c0_i32 = arith.constant 0 : i32
    %c0_i32_0 = arith.constant 0 : i32
    %c0_i32_1 = arith.constant 0 : i32
    return %c0_i32, %c0_i32_0 : i32, i32
  }
  func.func @transform_2(%arg0: i32) -> (i32, i32) {
    %c0_i32 = arith.constant 0 : i32
    %c0_i32_0 = arith.constant 0 : i32
    %c0_i32_1 = arith.constant 0 : i32
    return %c0_i32, %c0_i32_0 : i32, i32
  }
  func.func @transform_3(%arg0: i32) -> (i32, i32) {
    %c0_i32 = arith.constant 0 : i32
    %c0_i32_0 = arith.constant 0 : i32
    %c0_i32_1 = arith.constant 0 : i32
    return %c0_i32, %c0_i32_0 : i32, i32
  }
  func.func @transform_4(%arg0: i32) -> i32 {
    %c0_i32 = arith.constant 0 : i32
    %c0_i32_0 = arith.constant 0 : i32
    return %c0_i32 : i32
  }
  func.func @transform_5(%arg0: i32) -> (i32, i32, i32) {
    %c0_i32 = arith.constant 0 : i32
    %c0_i32_0 = arith.constant 0 : i32
    %c0_i32_1 = arith.constant 0 : i32
    return %arg0, %c0_i32, %c0_i32_0 : i32, i32, i32
  }
}

module attributes {stable_mosaic.version = 11 : i64} {
  func.func @_score_kernel(%arg0: i32, %arg1: memref<8x32xf32, #tpu.memory_space<vmem>>, %arg2: memref<32x32xf32, #tpu.memory_space<vmem>>, %arg3: memref<1x32xf32, #tpu.memory_space<vmem>>, %arg4: memref<8x32xf32, #tpu.memory_space<vmem>>, %arg5: memref<1xf32, #tpu.memory_space<smem>>, %arg6: memref<1x1x8xf32, #tpu.memory_space<vmem>>) attributes {dimension_semantics = [#tpu.dimension_semantics<parallel>], iteration_bounds = array<i64: 1>, scalar_prefetch = 0 : i64, scratch_operands = 0 : i64, tpu.core_type = #tpu.core_type<tc>, window_params = [{transform_indices = @transform_0, window_bounds = array<i64: 8, 32>}, {pipeline_mode = #tpu.pipeline_mode<synchronous>, transform_indices = @transform_1, window_bounds = array<i64: 32, 32>}, {pipeline_mode = #tpu.pipeline_mode<synchronous>, transform_indices = @transform_2, window_bounds = array<i64: 1, 32>}, {pipeline_mode = #tpu.pipeline_mode<synchronous>, transform_indices = @transform_3, window_bounds = array<i64: 8, 32>}, {transform_indices = @transform_4, window_bounds = array<i64: 1>}, {transform_indices = @transform_5, window_bounds = array<i64: 1, 1, 8>}]} {
    %c0 = arith.constant 0 : index
    %c0_0 = arith.constant 0 : index
    %0 = vector.load %arg1[%c0, %c0_0] : memref<8x32xf32, #tpu.memory_space<vmem>>, vector<8x32xf32>
    %c0_1 = arith.constant 0 : index
    %c0_2 = arith.constant 0 : index
    %1 = vector.load %arg2[%c0_1, %c0_2] : memref<32x32xf32, #tpu.memory_space<vmem>>, vector<32x32xf32>
    %cst = arith.constant dense<0.000000e+00> : vector<8x32xf32>
    %2 = tpu.matmul %0, %1, %cst {dimension_numbers = #tpu.dot_dimension_numbers<[1], [0], [0], [1], [0, 0, 1, 1], [], []>} : vector<8x32xf32>, vector<32x32xf32>, vector<8x32xf32> -> vector<8x32xf32>
    %c0_3 = arith.constant 0 : index
    %c0_4 = arith.constant 0 : index
    %3 = vector.load %arg3[%c0_3, %c0_4] : memref<1x32xf32, #tpu.memory_space<vmem>>, vector<1x32xf32>
    %4 = vector.broadcast %3 : vector<1x32xf32> to vector<8x32xf32>
    %5 = arith.addf %2, %4 : vector<8x32xf32>
    %6 = math.tanh %5 : vector<8x32xf32>
    %c0_5 = arith.constant 0 : index
    %c0_6 = arith.constant 0 : index
    %7 = vector.load %arg4[%c0_5, %c0_6] : memref<8x32xf32, #tpu.memory_space<vmem>>, vector<8x32xf32>
    %cst_7 = arith.constant dense<0.000000e+00> : vector<8x8xf32>
    %8 = tpu.matmul %7, %6, %cst_7 {dimension_numbers = #tpu.dot_dimension_numbers<[1], [1], [0], [0], [0, 0, 1, 0], [], []>} : vector<8x32xf32>, vector<8x32xf32>, vector<8x8xf32> -> vector<8x8xf32>
    %9 = vector.extract_strided_slice %8 {offsets = [0, 0], sizes = [1, 8], strides = [1, 1]} : vector<8x8xf32> to vector<1x8xf32>
    %c0_8 = arith.constant 0 : index
    %10 = memref.load %arg5[%c0_8] : memref<1xf32, #tpu.memory_space<smem>>
    %11 = vector.broadcast %10 : f32 to vector<1x8xf32>
    %12 = arith.addf %9, %11 : vector<1x8xf32>
    %13 = vector.shape_cast %12 : vector<1x8xf32> to vector<1x1x8xf32>
    %c0_9 = arith.constant 0 : index
    %c0_10 = arith.constant 0 : index
    %c0_11 = arith.constant 0 : index
    %14 = vector.load %arg6[%c0_9, %c0_10, %c0_11] : memref<1x1x8xf32, #tpu.memory_space<vmem>>, vector<1x1x8xf32>
    tpu.vector_store %arg6[%c0_9, %c0_10, %c0_11], %13 {strides = array<i32>} : memref<1x1x8xf32, #tpu.memory_space<vmem>>, vector<1x1x8xf32>,
    return
  }
  func.func @transform_0(%arg0: i32) -> (i32, i32) {
    %c0_i32 = arith.constant 0 : i32
    %c0_i32_0 = arith.constant 0 : i32
    return %arg0, %c0_i32 : i32, i32
  }
  func.func @transform_1(%arg0: i32) -> (i32, i32) {
    %c0_i32 = arith.constant 0 : i32
    %c0_i32_0 = arith.constant 0 : i32
    %c0_i32_1 = arith.constant 0 : i32
    return %c0_i32, %c0_i32_0 : i32, i32
  }
  func.func @transform_2(%arg0: i32) -> (i32, i32) {
    %c0_i32 = arith.constant 0 : i32
    %c0_i32_0 = arith.constant 0 : i32
    %c0_i32_1 = arith.constant 0 : i32
    return %c0_i32, %c0_i32_0 : i32, i32
  }
  func.func @transform_3(%arg0: i32) -> (i32, i32) {
    %c0_i32 = arith.constant 0 : i32
    %c0_i32_0 = arith.constant 0 : i32
    %c0_i32_1 = arith.constant 0 : i32
    return %c0_i32, %c0_i32_0 : i32, i32
  }
  func.func @transform_4(%arg0: i32) -> i32 {
    %c0_i32 = arith.constant 0 : i32
    %c0_i32_0 = arith.constant 0 : i32
    return %c0_i32 : i32
  }
  func.func @transform_5(%arg0: i32) -> (i32, i32, i32) {
    %c0_i32 = arith.constant 0 : i32
    %c0_i32_0 = arith.constant 0 : i32
    %c0_i32_1 = arith.constant 0 : i32
    return %arg0, %c0_i32, %c0_i32_0 : i32, i32, i32
  }
}

</mosaic_0001>

<bundles_post_ra>
// kernel: tpu_custom_call.1
= control target key start
LH: loop header
LB: loop body
LE: loop exit
PB: predicated region body
PF: predicated region fallthrough
CT: control target
= control target key end

     0   :  { %11 = vsyncpa [#allocation4], 0  ;;  %s438_s0 = inlined_call_operand.hbm [shape: f32[8,32], index: 0, kind: input, shape index: {}]   ;;  %s439_s1 = inlined_call_operand.hbm [shape: f32[32,32], index: 1, kind: input, shape index: {}]   ;;  %s440_s2 = inlined_call_operand.vmem [shape: f32[1,32], index: 2, kind: input, shape index: {}]   ;;  %s441_s3 = inlined_call_operand.vmem [shape: f32[8,32], index: 3, kind: input, shape index: {}]   ;;  %s442_s4 = inlined_call_operand.<no memory space> [shape: f32[1], index: 4, kind: input, shape index: {}]   ;;  %s443_s5 = inlined_call_operand.hbm [shape: f32[1,1,8], index: 5, kind: output, shape index: {}]  }
   0x1   :  { %12 = vsyncpa [#allocation7], 0 }
   0x2   :  { %13 = vsyncpa [#allocation5], 0  ;;  %s348_s18 = smov [#allocation3]   ;;  %s349_s20 = smov [#allocation6]  }
   0x3   :  { %s20_s19 = sshll.u32 %s348_s18, 4  ;;  %s29_s21 = sshll.u32 %s349_s20, 4  ;;  %s21_s19 = int_to_ptr.vmem [resolvable:$true] %s20_s19  ;;  %s386_s21 = int_to_ptr.vmem [resolvable:$true] %s29_s21 }
   0x4   :  { %s276_s24 = scalar_lea.hbm %s438_s0, 128 }
   0x5   :  { %p277_p0 = scmp.ne.s32.totalorder %s438_s0, %s276_s24  ;;  %p280_p1 = scmp.lt.u32.totalorder %s276_s24, %s438_s0 }
   0x7   :  { %p282_p2 = pnand %p280_p1, %p277_p0 }
   0x9   :  { %285 = shalt.err (!%p282_p2)
}
   0xa   :  { %s286_s29 = scalar_lea.vmem %s21_s19, 128  ;;  %p291_p4 = scmp.lt.s32.totalorder %s21_s19, %s21_s19 }
   0xb   :  { %p287_p3 = scmp.ne.s32.totalorder %s21_s19, %s286_s29  ;;  %p292_p5 = scmp.lt.s32.totalorder %s286_s29, %s286_s29 }
   0xd   :  { %p293_p6 = por %p292_p5, %p291_p4 }
   0xf   :  { %p294_p7 = pnand %p293_p6, %p287_p3 }
  0x11   :  { %297 = shalt.err (!%p294_p7)
}
  0x12   :  { %23 = dma.hbm_to_vmem [thread:$0]  %s438_s0, 128, %s21_s19, [#allocation4]  }
  0x13   :  { %s298_s9 = scalar_lea.hbm %s439_s1, 512 }
  0x14   :  { %p299_p8 = scmp.ne.s32.totalorder %s439_s1, %s298_s9  ;;  %p302_p9 = scmp.lt.u32.totalorder %s298_s9, %s439_s1 }
  0x16   :  { %p304_p10 = pnand %p302_p9, %p299_p8 }
  0x18   :  { %307 = shalt.err (!%p304_p10)
}
  0x19   :  { %s308_s14 = scalar_lea.vmem %s386_s21, 512  ;;  %p313_p12 = scmp.lt.s32.totalorder %s386_s21, %s386_s21 }
  0x1a   :  { %p309_p11 = scmp.ne.s32.totalorder %s386_s21, %s308_s14  ;;  %p314_p13 = scmp.lt.s32.totalorder %s308_s14, %s308_s14 }
  0x1c   :  { %p315_p0 = por %p314_p13, %p313_p12 }
  0x1e   :  { %p316_p1 = pnand %p315_p0, %p309_p11 }
  0x20   :  { %319 = shalt.err (!%p316_p1)
}
  0x21   :  { %s350_s0 = smov 128   ;;  %s351_s15 = smov 8  }
  0x22   :  { %35 = dma.hbm_to_vmem [thread:$0]  %s439_s1, 512, %s386_s21, [#allocation7], %s350_s0, %s350_s0, %s351_s15  }
  0x23   :  { %342 = dma.done.wait [#allocation4], 128  }
  0x24   :  { %343 = vsyncadd [#allocation4], 4294967168 }
  0x25   :  { %344 = dma.done.wait [#allocation7], 512  }
  0x26   :  { %345 = vsyncadd [#allocation7], 4294966784  ;;  %v352_v0 = vmov 0.0|0.0   ;;  %vm353_vm0 = vmmov 0   ;;  %v354_v1 = vmov 0.0   ;;  %v49_v2 = vld [vmem:[#allocation6] sm:$0xff]  ;;  %v213_v15 = vstv %s442_s4 }
  0x27   :  { %260 = vmatprep.subr.bf16.mxu0 %v352_v0  ;;  %252 = vmatprep.mubr.msk.f32.mxu0 %vm353_vm0, %v354_v1  ;;  %v50_v3 = vld [vmem:[#allocation6 + $0x8] sm:$0xff]  ;;  %v51_v4 = vld [vmem:[#allocation6 + $0x10] sm:$0xff]  ;;  %v52_v6 = vld [vmem:[#allocation6 + $0x18] sm:$0xff]  ;;  %vm60_vm1 = vcmask 261120   ;;  %s355_s23 = smov [#allocation8]   ;;  %vm215_vm2 = vcmask 57344  }
  0x28   :  { %255 = vmatprep.subr.mxu1 %v354_v1  ;;  %257 = vmatprep.mubr.msk.f32.mxu1 %vm353_vm0, %v354_v1  ;;  %v261_v5 = vpack.c.bf16 %v50_v3, %v49_v2  ;;  %v264_v7 = vpack.c.bf16 %v52_v6, %v51_v4  ;;  %v48_v8 = vld [vmem:[#allocation3] sm:$0xff]  ;;  %s223_s24 = sshll.u32 %s355_s23, 4  ;;  %s224_s24 = int_to_ptr.vmem [resolvable:$true] %s223_s24 }
  0x29   :  { %v233_v9 = vld [vmem:[%s440_s2] ss:$0 sm:$0xff]  ;;  %s320_s2 = scalar_lea.vmem %s224_s24, 16  ;;  %s324_s25 = scalar_lea.vmem %s224_s24, 32 }
  0x2a   :  { %262 = vmatpush3.bf16.msra.mxu0 %v261_v5  ;;  %v135_v14 = vld [vmem:[%s441_s3] sm:$0xff]  ;;  %p321_p2 = scmp.ne.s32.totalorder %s224_s24, %s320_s2  ;;  %p325_p3 = scmp.lt.s32.totalorder %s224_s24, %s224_s24 }
  0x2b   :  { %263 = vmatprep.subr.bf16.mxu0 %v352_v0  ;;  %p326_p4 = scmp.lt.s32.totalorder %s324_s25, %s320_s2 }
  0x2d   :  { %p327_p5 = por %p326_p4, %p325_p3 }
  0x2e   :  { %265 = vmatpush3.bf16.msra.mxu0 %v264_v7 }
  0x2f   :  { %p328_p6 = pnand %p327_p5, %p321_p2 }
  0x31   :  { %253 = vmatmul.mubr.msk.f32.vlgmr.msra.gmra.mrb[0].mxu0 %vm60_vm1, %v48_v8 }
 0x104   :  { %v130_v10 = vpop.f32.mrb[0].mxu0 }
 0x105   :  { %v131_v11 = vadd.f32 %v233_v9, %v130_v10  ;;  %v254_v12 = vpop.f32.mrb[1].mxu0 }
 0x107   :  { %274 = vtanh.f32 %v131_v11 }
 0x111   :  { %v275_v13 = vpop.eup %274 }
 0x112   :  { %256 = vmatpush3.xpose.msk.msra.mxu1 %vm60_vm1, %v275_v13 }
 0x115   :  { %258 = vmatmul.mubr.msk.f32.vlgmr.msra.gmra.mrb[0].mxu1 %vm60_vm1, %v135_v14 }
 0x1e8   :  { %v208_v16 = vpop.f32.mrb[0].mxu1 }
 0x1e9   :  { %v214_v17 = vadd.f32 %v213_v15, %v208_v16  ;;  %v259_v18 = vpop.f32.mrb[1].mxu1 }
 0x1eb   :  { %216 = vst.msk [vmem:[#allocation8] sm:$0x1] %vm215_vm2, %v214_v17 }
 0x1ec   :  { %331 = shalt.err (!%p328_p6)
}
 0x1ed   :  { %s332_s4 = scalar_lea.hbm %s443_s5, 16 }
 0x1ee   :  { %p333_p7 = scmp.ne.s32.totalorder %s443_s5, %s332_s4  ;;  %p336_p8 = scmp.lt.u32.totalorder %s332_s4, %s443_s5 }
 0x1f0   :  { %p338_p9 = pnand %p336_p8, %p333_p7 }
 0x1f2   :  { %341 = shalt.err (!%p338_p9)
}
 0x1f3   :  { %226 = dma.vmem_to_hbm [thread:$0]  %s224_s24, 16, %s443_s5, [#allocation5]  }
 0x1f4   :  { %346 = dma.done.wait [#allocation5], 16  }
 0x1f5   :  { %347 = vsyncadd [#allocation5], 4294967280 }
 0x1f6   :  { %230 = vsyncpa [#allocation4], 1 }
 0x1f7   :  { %231 = vsyncpa [#allocation7], 1 }
 0x1f8   :  { %232 = vsyncpa [#allocation5], 1 }

// kernel: tpu_custom_call.1
= control target key start
LH: loop header
LB: loop body
LE: loop exit
PB: predicated region body
PF: predicated region fallthrough
CT: control target
= control target key end

     0   :  { %11 = vsyncpa [#allocation4], 0  ;;  %s438_s0 = inlined_call_operand.hbm [shape: f32[8,32], index: 0, kind: input, shape index: {}]   ;;  %s439_s1 = inlined_call_operand.hbm [shape: f32[32,32], index: 1, kind: input, shape index: {}]   ;;  %s440_s2 = inlined_call_operand.vmem [shape: f32[1,32], index: 2, kind: input, shape index: {}]   ;;  %s441_s3 = inlined_call_operand.vmem [shape: f32[8,32], index: 3, kind: input, shape index: {}]   ;;  %s442_s4 = inlined_call_operand.<no memory space> [shape: f32[1], index: 4, kind: input, shape index: {}]   ;;  %s443_s5 = inlined_call_operand.hbm [shape: f32[1,1,8], index: 5, kind: output, shape index: {}]  }
   0x1   :  { %12 = vsyncpa [#allocation7], 0 }
   0x2   :  { %13 = vsyncpa [#allocation5], 0  ;;  %s348_s18 = smov [#allocation3]   ;;  %s349_s20 = smov [#allocation6]  }
   0x3   :  { %s20_s19 = sshll.u32 %s348_s18, 4  ;;  %s29_s21 = sshll.u32 %s349_s20, 4  ;;  %s21_s19 = int_to_ptr.vmem [resolvable:$true] %s20_s19  ;;  %s386_s21 = int_to_ptr.vmem [resolvable:$true] %s29_s21 }
   0x4   :  { %s276_s24 = scalar_lea.hbm %s438_s0, 128 }
   0x5   :  { %p277_p0 = scmp.ne.s32.totalorder %s438_s0, %s276_s24  ;;  %p280_p1 = scmp.lt.u32.totalorder %s276_s24, %s438_s0 }
   0x7   :  { %p282_p2 = pnand %p280_p1, %p277_p0 }
   0x9   :  { %285 = shalt.err (!%p282_p2)
}
   0xa   :  { %s286_s29 = scalar_lea.vmem %s21_s19, 128  ;;  %p291_p4 = scmp.lt.s32.totalorder %s21_s19, %s21_s19 }
   0xb   :  { %p287_p3 = scmp.ne.s32.totalorder %s21_s19, %s286_s29  ;;  %p292_p5 = scmp.lt.s32.totalorder %s286_s29, %s286_s29 }
   0xd   :  { %p293_p6 = por %p292_p5, %p291_p4 }
   0xf   :  { %p294_p7 = pnand %p293_p6, %p287_p3 }
  0x11   :  { %297 = shalt.err (!%p294_p7)
}
  0x12   :  { %23 = dma.hbm_to_vmem [thread:$0]  %s438_s0, 128, %s21_s19, [#allocation4]  }
  0x13   :  { %s298_s9 = scalar_lea.hbm %s439_s1, 512 }
  0x14   :  { %p299_p8 = scmp.ne.s32.totalorder %s439_s1, %s298_s9  ;;  %p302_p9 = scmp.lt.u32.totalorder %s298_s9, %s439_s1 }
  0x16   :  { %p304_p10 = pnand %p302_p9, %p299_p8 }
  0x18   :  { %307 = shalt.err (!%p304_p10)
}
  0x19   :  { %s308_s14 = scalar_lea.vmem %s386_s21, 512  ;;  %p313_p12 = scmp.lt.s32.totalorder %s386_s21, %s386_s21 }
  0x1a   :  { %p309_p11 = scmp.ne.s32.totalorder %s386_s21, %s308_s14  ;;  %p314_p13 = scmp.lt.s32.totalorder %s308_s14, %s308_s14 }
  0x1c   :  { %p315_p0 = por %p314_p13, %p313_p12 }
  0x1e   :  { %p316_p1 = pnand %p315_p0, %p309_p11 }
  0x20   :  { %319 = shalt.err (!%p316_p1)
}
  0x21   :  { %s350_s0 = smov 128   ;;  %s351_s15 = smov 8  }
  0x22   :  { %35 = dma.hbm_to_vmem [thread:$0]  %s439_s1, 512, %s386_s21, [#allocation7], %s350_s0, %s350_s0, %s351_s15  }
  0x23   :  { %342 = dma.done.wait [#allocation4], 128  }
  0x24   :  { %343 = vsyncadd [#allocation4], 4294967168 }
  0x25   :  { %344 = dma.done.wait [#allocation7], 512  }
  0x26   :  { %345 = vsyncadd [#allocation7], 4294966784  ;;  %v352_v0 = vmov 0.0|0.0   ;;  %vm353_vm0 = vmmov 0   ;;  %v354_v1 = vmov 0.0   ;;  %v49_v2 = vld [vmem:[#allocation6] sm:$0xff]  ;;  %v213_v15 = vstv %s442_s4 }
  0x27   :  { %260 = vmatprep.subr.bf16.mxu0 %v352_v0  ;;  %252 = vmatprep.mubr.msk.f32.mxu0 %vm353_vm0, %v354_v1  ;;  %v50_v3 = vld [vmem:[#allocation6 + $0x8] sm:$0xff]  ;;  %v51_v4 = vld [vmem:[#allocation6 + $0x10] sm:$0xff]  ;;  %v52_v6 = vld [vmem:[#allocation6 + $0x18] sm:$0xff]  ;;  %vm60_vm1 = vcmask 261120   ;;  %s355_s23 = smov [#allocation8]   ;;  %vm215_vm2 = vcmask 57344  }
  0x28   :  { %255 = vmatprep.subr.mxu1 %v354_v1  ;;  %257 = vmatprep.mubr.msk.f32.mxu1 %vm353_vm0, %v354_v1  ;;  %v261_v5 = vpack.c.bf16 %v50_v3, %v49_v2  ;;  %v264_v7 = vpack.c.bf16 %v52_v6, %v51_v4  ;;  %v48_v8 = vld [vmem:[#allocation3] sm:$0xff]  ;;  %s223_s24 = sshll.u32 %s355_s23, 4  ;;  %s224_s24 = int_to_ptr.vmem [resolvable:$true] %s223_s24 }
  0x29   :  { %v233_v9 = vld [vmem:[%s440_s2] ss:$0 sm:$0xff]  ;;  %s320_s2 = scalar_lea.vmem %s224_s24, 16  ;;  %s324_s25 = scalar_lea.vmem %s224_s24, 32 }
  0x2a   :  { %262 = vmatpush3.bf16.msra.mxu0 %v261_v5  ;;  %v135_v14 = vld [vmem:[%s441_s3] sm:$0xff]  ;;  %p321_p2 = scmp.ne.s32.totalorder %s224_s24, %s320_s2  ;;  %p325_p3 = scmp.lt.s32.totalorder %s224_s24, %s224_s24 }
  0x2b   :  { %263 = vmatprep.subr.bf16.mxu0 %v352_v0  ;;  %p326_p4 = scmp.lt.s32.totalorder %s324_s25, %s320_s2 }
  0x2d   :  { %p327_p5 = por %p326_p4, %p325_p3 }
  0x2e   :  { %265 = vmatpush3.bf16.msra.mxu0 %v264_v7 }
  0x2f   :  { %p328_p6 = pnand %p327_p5, %p321_p2 }
  0x31   :  { %253 = vmatmul.mubr.msk.f32.vlgmr.msra.gmra.mrb[0].mxu0 %vm60_vm1, %v48_v8 }
 0x104   :  { %v130_v10 = vpop.f32.mrb[0].mxu0 }
 0x105   :  { %v131_v11 = vadd.f32 %v233_v9, %v130_v10  ;;  %v254_v12 = vpop.f32.mrb[1].mxu0 }
 0x107   :  { %274 = vtanh.f32 %v131_v11 }
 0x111   :  { %v275_v13 = vpop.eup %274 }
 0x112   :  { %256 = vmatpush3.xpose.msk.msra.mxu1 %vm60_vm1, %v275_v13 }
 0x115   :  { %258 = vmatmul.mubr.msk.f32.vlgmr.msra.gmra.mrb[0].mxu1 %vm60_vm1, %v135_v14 }
 0x1e8   :  { %v208_v16 = vpop.f32.mrb[0].mxu1 }
 0x1e9   :  { %v214_v17 = vadd.f32 %v213_v15, %v208_v16  ;;  %v259_v18 = vpop.f32.mrb[1].mxu1 }
 0x1eb   :  { %216 = vst.msk [vmem:[#allocation8] sm:$0x1] %vm215_vm2, %v214_v17 }
 0x1ec   :  { %331 = shalt.err (!%p328_p6)
}
 0x1ed   :  { %s332_s4 = scalar_lea.hbm %s443_s5, 16 }
 0x1ee   :  { %p333_p7 = scmp.ne.s32.totalorder %s443_s5, %s332_s4  ;;  %p336_p8 = scmp.lt.u32.totalorder %s332_s4, %s443_s5 }
 0x1f0   :  { %p338_p9 = pnand %p336_p8, %p333_p7 }
 0x1f2   :  { %341 = shalt.err (!%p338_p9)
}
 0x1f3   :  { %226 = dma.vmem_to_hbm [thread:$0]  %s224_s24, 16, %s443_s5, [#allocation5]  }
 0x1f4   :  { %346 = dma.done.wait [#allocation5], 16  }
 0x1f5   :  { %347 = vsyncadd [#allocation5], 4294967280 }
 0x1f6   :  { %230 = vsyncpa [#allocation4], 1 }
 0x1f7   :  { %231 = vsyncpa [#allocation7], 1 }
 0x1f8   :  { %232 = vsyncpa [#allocation5], 1 }

</bundles_post_ra>
